<compile_context>
chip_gen: v5e
topology: v5e:2x2
jax: 0.10.0
libtpu: 0.0.40
codegen_flags: <defaults>
</compile_context>

<pallas_src>
import jax
import jax.numpy as jnp
import numpy as np
from jax.experimental import pallas as pl
from jax.experimental.pallas import tpu as pltpu


def _conv_block_kernel(x_ref, t1_ref, b1_ref, t2_ref, b2_ref, sd_ref, su_ref, o_ref):
    # x_ref : (M, W*Cin)        bf16; M = images_per_step * Hp rows (Hp % 8 == 0)
    # t1_ref: (W*Cin, 3*W*Cout) bf16; 3 vertical taps concatenated along columns
    # b1_ref: (1, W*Cout)       f32 BN1 bias (scale pre-folded into t1)
    # t2_ref: (W*Cout, 3*W*Cout) bf16
    # b2_ref: (1, W*Cout)       f32
    # sd_ref/su_ref: (M, M)     f32 0/1 matrices: shift rows down/up by one image row,
    #                           zeroing at image boundaries (vertical conv padding)
    # o_ref : (M, W*Cout)       f32 lane-dense output
    wco = o_ref.shape[-1]
    f32 = jnp.float32

    sd = sd_ref[...]
    su = su_ref[...]

    # ---- conv1: one N-fused matmul; vertical taps combined via shift matrices ----
    p = jnp.dot(x_ref[...], t1_ref[...], preferred_element_type=f32)      # (M, 3*WCo)
    acc = jnp.dot(sd, p[:, :wco], preferred_element_type=f32)             # tap kh=0 (row above)
    acc = acc + jnp.dot(su, p[:, 2 * wco:], preferred_element_type=f32)   # tap kh=2 (row below)
    acc = acc + p[:, wco:2 * wco]                                         # tap kh=1 (same row)
    mid = jnp.maximum(acc + b1_ref[...], 0.0).astype(jnp.bfloat16)        # BN1 bias + ReLU

    # ---- conv2: identical structure on the intermediate ----
    q = jnp.dot(mid, t2_ref[...], preferred_element_type=f32)             # (M, 3*WCo)
    acc2 = jnp.dot(sd, q[:, :wco], preferred_element_type=f32)
    acc2 = acc2 + jnp.dot(su, q[:, 2 * wco:], preferred_element_type=f32)
    acc2 = acc2 + q[:, wco:2 * wco]
    y2 = jnp.maximum(acc2 + b2_ref[...], 0.0)                             # BN2 bias + ReLU

    o_ref[...] = y2.astype(o_ref.dtype)


def _band_toeplitz_cat(w_hwio, W):
    """(3,3,Ci,Co) HWIO weights -> (W*Ci, 3*W*Co) banded block-Toeplitz weights.

    Column block kh*W*Co:(kh+1)*W*Co holds vertical tap kh.  Within a tap,
    T[wi*Ci+ci, w*Co+co] = w_hwio[kh, wi-w+1, ci, co] for |wi-w| <= 1, else 0, so the
    horizontal taps AND the horizontal zero padding are folded into the matrix.
    """
    _, _, Ci, Co = w_hwio.shape
    t3 = jnp.zeros((3, W * Ci, W * Co), w_hwio.dtype)
    for kw in range(3):
        for w in range(W):
            wi = w + kw - 1
            if 0 <= wi < W:
                t3 = t3.at[:, wi * Ci:(wi + 1) * Ci, w * Co:(w + 1) * Co].set(w_hwio[:, kw])
    return jnp.transpose(t3, (1, 0, 2)).reshape(W * Ci, 3 * W * Co)


def _shift_matrices(n_imgs, Hp, H):
    """0/1 matrices moving matmul-output rows by one image row, with boundary zeroing.

    (sd @ y)[i] = y[i-1] when row i is not the first row of its image block, else 0;
    (su @ y)[i] = y[i+1] when row i is not past the last valid image row, else 0.
    They implement the vertical taps' +-1 row offsets AND the conv's vertical zero
    padding exactly, and never mix rows of different images, so a whole batch tile
    can be flattened into one matmul M axis.
    """
    M = n_imgs * Hp
    sd = np.zeros((M, M), np.float32)
    su = np.zeros((M, M), np.float32)
    for i in range(M):
        r = i % Hp
        if r >= 1:
            sd[i, i - 1] = 1.0
        if r <= H - 2:
            su[i, i + 1] = 1.0
    return jnp.asarray(sd), jnp.asarray(su)


@jax.jit
def conv_block(x_nchw, w1, g1, be1, m1, v1, w2, g2, be2, m2, v2, eps=1e-5):
    """Pallas ConvBlock forward. x_nchw: (N, Cin, H, W) f32; weights in PyTorch OIHW;
    BatchNorm in eval mode (running stats). Returns (N, Cout, H, W) f32."""
    N, Cin, H, W = x_nchw.shape
    Cout = w1.shape[0]
    WCi, WCo = W * Cin, W * Cout
    Hp = -(-H // 8) * 8            # image rows padded up to a sublane multiple

    # --- eval-mode BN folding (in f32), then bf16 cast of the MXU operands ---
    s1 = g1 / jnp.sqrt(v1 + eps)
    b1 = be1 - m1 * s1
    s2 = g2 / jnp.sqrt(v2 + eps)
    b2 = be2 - m2 * s2
    w1_hwio = jnp.transpose(w1, (2, 3, 1, 0)) * s1        # (3,3,Cin,Cout)
    w2_hwio = jnp.transpose(w2, (2, 3, 1, 0)) * s2        # (3,3,Cout,Cout)
    t1 = _band_toeplitz_cat(w1_hwio, W).astype(jnp.bfloat16)   # (WCi, 3*WCo)
    t2 = _band_toeplitz_cat(w2_hwio, W).astype(jnp.bfloat16)   # (WCo, 3*WCo)
    b1r = jnp.tile(b1, W).reshape(1, WCo)
    b2r = jnp.tile(b2, W).reshape(1, WCo)

    # --- lane-dense activations: (N,Cin,H,W) -> (N*Hp, W*Cin), channels in lanes ---
    x3 = jnp.transpose(x_nchw, (0, 2, 3, 1)).reshape(N, H, WCi)
    if Hp != H:
        # only when H is not a sublane multiple; padded rows are never consumed.
        x3 = jnp.pad(x3, ((0, 0), (0, Hp - H), (0, 0)))
    x2 = x3.reshape(N * Hp, WCi).astype(jnp.bfloat16)

    # --- images per grid step: flatten enough rows into M to feed the MXU ---
    target_rows = 256
    B = max(1, min(N, target_rows // Hp))
    while N % B:
        B -= 1
    Mb = B * Hp
    sd, su = _shift_matrices(B, Hp, H)

    out2 = pl.pallas_call(
        _conv_block_kernel,
        out_shape=jax.ShapeDtypeStruct((N * Hp, WCo), jnp.float32),
        grid_spec=pltpu.PrefetchScalarGridSpec(
            num_scalar_prefetch=0,
            grid=(N // B,),
            in_specs=[
                pl.BlockSpec((Mb, WCi), lambda n: (n, 0)),
                # Grid-invariant operands below (constant index_map); fetched once per
                # core since their block index never changes.
                pl.BlockSpec((WCi, 3 * WCo), lambda n: (0, 0)),
                pl.BlockSpec((1, WCo), lambda n: (0, 0)),
                pl.BlockSpec((WCo, 3 * WCo), lambda n: (0, 0)),
                pl.BlockSpec((1, WCo), lambda n: (0, 0)),
                pl.BlockSpec((Mb, Mb), lambda n: (0, 0)),
                pl.BlockSpec((Mb, Mb), lambda n: (0, 0)),
            ],
            out_specs=pl.BlockSpec((Mb, WCo), lambda n: (n, 0)),
        ),
        compiler_params=pltpu.CompilerParams(
            dimension_semantics=("parallel",),
            vmem_limit_bytes=32 * 1024 * 1024,
        ),
    )(x2, t1, b1r, t2, b2r, sd, su)

    out = out2.reshape(N, Hp, W, Cout)[:, :H]
    # NHWC -> NCHW only to honor the module's output contract; drop this transpose if
    # the consumer can take the lane-dense NHWC layout directly.
    return jnp.transpose(out, (0, 3, 1, 2))


def _reference(x, w1, g1, be1, m1, v1, w2, g2, be2, m2, v2, eps=1e-5, cast_bf16=False):
    """Pure-JAX reference matching PyTorch eval-mode semantics (NCHW / OIHW).

    cast_bf16=True mimics the kernel's numerics: BN scale folded into the weights in
    f32, matmul operands cast to bf16, f32 accumulation, f32 bias + ReLU.
    """
    def conv(x, w):
        if cast_bf16:
            x = x.astype(jnp.bfloat16)
            w = w.astype(jnp.bfloat16)
        return jax.lax.conv_general_dilated(
            x, w, (1, 1), ((1, 1), (1, 1)),
            dimension_numbers=("NCHW", "OIHW", "NCHW"),
            preferred_element_type=jnp.float32)

    def block(x, w, g, be, m, v):
        if cast_bf16:
            s = g / jnp.sqrt(v + eps)
            y = conv(x, w * s[:, None, None, None]) + (be - m * s).reshape(1, -1, 1, 1)
        else:
            y = conv(x, w)
            y = (y - m.reshape(1, -1, 1, 1)) / jnp.sqrt(v.reshape(1, -1, 1, 1) + eps) \
                * g.reshape(1, -1, 1, 1) + be.reshape(1, -1, 1, 1)
        return jnp.maximum(y, 0.0)

    y = block(x, w1, g1, be1, m1, v1)
    return block(y, w2, g2, be2, m2, v2)


if __name__ == "__main__":
    N, Cin, Cout, H, W = 2, 4, 8, 16, 16
    key = jax.random.PRNGKey(0)
    ks = jax.random.split(key, 12)

    x = jax.random.normal(ks[0], (N, Cin, H, W), jnp.float32)

    # Deterministic synthetic parameters (PyTorch shapes: OIHW weights, (C,) BN).
    w1 = 0.1 * jax.random.normal(ks[1], (Cout, Cin, 3, 3), jnp.float32)
    g1 = 1.0 + 0.1 * jax.random.normal(ks[2], (Cout,), jnp.float32)
    be1 = 0.1 * jax.random.normal(ks[3], (Cout,), jnp.float32)
    m1 = 0.1 * jax.random.normal(ks[4], (Cout,), jnp.float32)
    v1 = 0.5 + jax.nn.softplus(jax.random.normal(ks[5], (Cout,), jnp.float32))

    w2 = 0.1 * jax.random.normal(ks[6], (Cout, Cout, 3, 3), jnp.float32)
    g2 = 1.0 + 0.1 * jax.random.normal(ks[7], (Cout,), jnp.float32)
    be2 = 0.1 * jax.random.normal(ks[8], (Cout,), jnp.float32)
    m2 = 0.1 * jax.random.normal(ks[9], (Cout,), jnp.float32)
    v2 = 0.5 + jax.nn.softplus(jax.random.normal(ks[10], (Cout,), jnp.float32))

    args = (x, w1, g1, be1, m1, v1, w2, g2, be2, m2, v2)
    out = jax.block_until_ready(conv_block(*args))

    # Tight check vs a reference using the same bf16 operand quantization / f32 accum.
    ref_bf16 = _reference(*args, cast_bf16=True)
    err_bf16 = float(jnp.max(jnp.abs(out - ref_bf16)))
    if err_bf16 > 5e-3:
        raise AssertionError(f"mismatch vs bf16-matched reference: max|diff|={err_bf16}")

    # Loose sanity check vs the full-f32 original-module semantics (bf16 rounding bound).
    ref_f32 = _reference(*args, cast_bf16=False)
    err_f32 = float(jnp.max(jnp.abs(out - ref_f32)))
    if err_f32 > 8e-2:
        raise AssertionError(f"mismatch vs f32 reference: max|diff|={err_f32}")

    print("KERNEL_OK")
</pallas_src>

<mosaic_0001>
module attributes {stable_mosaic.version = 11 : i64} {
  func.func @_conv_block_kernel(%arg0: i32, %arg1: memref<32x64xbf16, #tpu.memory_space<vmem>>, %arg2: memref<64x384xbf16, #tpu.memory_space<vmem>>, %arg3: memref<1x128xf32, #tpu.memory_space<vmem>>, %arg4: memref<128x384xbf16, #tpu.memory_space<vmem>>, %arg5: memref<1x128xf32, #tpu.memory_space<vmem>>, %arg6: memref<32x32xf32, #tpu.memory_space<vmem>>, %arg7: memref<32x32xf32, #tpu.memory_space<vmem>>, %arg8: memref<32x128xf32, #tpu.memory_space<vmem>>) attributes {dimension_semantics = [#tpu.dimension_semantics<parallel>], iteration_bounds = array<i64: 1>, scalar_prefetch = 0 : i64, scratch_operands = 0 : i64, tpu.core_type = #tpu.core_type<tc>, window_params = [{transform_indices = @transform_0, window_bounds = array<i64: 32, 64>}, {pipeline_mode = #tpu.pipeline_mode<synchronous>, transform_indices = @transform_1, window_bounds = array<i64: 64, 384>}, {pipeline_mode = #tpu.pipeline_mode<synchronous>, transform_indices = @transform_2, window_bounds = array<i64: 1, 128>}, {pipeline_mode = #tpu.pipeline_mode<synchronous>, transform_indices = @transform_3, window_bounds = array<i64: 128, 384>}, {pipeline_mode = #tpu.pipeline_mode<synchronous>, transform_indices = @transform_4, window_bounds = array<i64: 1, 128>}, {pipeline_mode = #tpu.pipeline_mode<synchronous>, transform_indices = @transform_5, window_bounds = array<i64: 32, 32>}, {pipeline_mode = #tpu.pipeline_mode<synchronous>, transform_indices = @transform_6, window_bounds = array<i64: 32, 32>}, {transform_indices = @transform_7, window_bounds = array<i64: 32, 128>}]} {
    %c0 = arith.constant 0 : index
    %c0_0 = arith.constant 0 : index
    %0 = vector.load %arg6[%c0, %c0_0] : memref<32x32xf32, #tpu.memory_space<vmem>>, vector<32x32xf32>
    %c0_1 = arith.constant 0 : index
    %c0_2 = arith.constant 0 : index
    %1 = vector.load %arg7[%c0_1, %c0_2] : memref<32x32xf32, #tpu.memory_space<vmem>>, vector<32x32xf32>
    %c0_3 = arith.constant 0 : index
    %c0_4 = arith.constant 0 : index
    %2 = vector.load %arg1[%c0_3, %c0_4] : memref<32x64xbf16, #tpu.memory_space<vmem>>, vector<32x64xbf16>
    %c0_5 = arith.constant 0 : index
    %c0_6 = arith.constant 0 : index
    %3 = vector.load %arg2[%c0_5, %c0_6] : memref<64x384xbf16, #tpu.memory_space<vmem>>, vector<64x384xbf16>
    %cst = arith.constant dense<0.000000e+00> : vector<32x384xf32>
    %4 = tpu.matmul %2, %3, %cst {dimension_numbers = #tpu.dot_dimension_numbers<[1], [0], [0], [1], [0, 0, 1, 1], [], []>} : vector<32x64xbf16>, vector<64x384xbf16>, vector<32x384xf32> -> vector<32x384xf32>
    %5 = vector.extract_strided_slice %4 {offsets = [0, 0], sizes = [32, 128], strides = [1, 1]} : vector<32x384xf32> to vector<32x128xf32>
    %cst_7 = arith.constant dense<0.000000e+00> : vector<32x128xf32>
    %6 = tpu.matmul %0, %5, %cst_7 {dimension_numbers = #tpu.dot_dimension_numbers<[1], [0], [0], [1], [0, 0, 1, 1], [], []>} : vector<32x32xf32>, vector<32x128xf32>, vector<32x128xf32> -> vector<32x128xf32>
    %7 = vector.extract_strided_slice %4 {offsets = [0, 256], sizes = [32, 128], strides = [1, 1]} : vector<32x384xf32> to vector<32x128xf32>
    %cst_8 = arith.constant dense<0.000000e+00> : vector<32x128xf32>
    %8 = tpu.matmul %1, %7, %cst_8 {dimension_numbers = #tpu.dot_dimension_numbers<[1], [0], [0], [1], [0, 0, 1, 1], [], []>} : vector<32x32xf32>, vector<32x128xf32>, vector<32x128xf32> -> vector<32x128xf32>
    %9 = arith.addf %6, %8 : vector<32x128xf32>
    %10 = vector.extract_strided_slice %4 {offsets = [0, 128], sizes = [32, 128], strides = [1, 1]} : vector<32x384xf32> to vector<32x128xf32>
    %11 = arith.addf %9, %10 : vector<32x128xf32>
    %c0_9 = arith.constant 0 : index
    %c0_10 = arith.constant 0 : index
    %12 = vector.load %arg3[%c0_9, %c0_10] : memref<1x128xf32, #tpu.memory_space<vmem>>, vector<1x128xf32>
    %13 = vector.broadcast %12 : vector<1x128xf32> to vector<32x128xf32>
    %14 = arith.addf %11, %13 : vector<32x128xf32>
    %cst_11 = arith.constant 0.000000e+00 : f32
    %15 = vector.broadcast %cst_11 : f32 to vector<32x128xf32>
    %16 = arith.maximumf %14, %15 : vector<32x128xf32>
    %17 = arith.truncf %16 : vector<32x128xf32> to vector<32x128xbf16>
    %c0_12 = arith.constant 0 : index
    %c0_13 = arith.constant 0 : index
    %18 = vector.load %arg4[%c0_12, %c0_13] : memref<128x384xbf16, #tpu.memory_space<vmem>>, vector<128x384xbf16>
    %cst_14 = arith.constant dense<0.000000e+00> : vector<32x384xf32>
    %19 = tpu.matmul %17, %18, %cst_14 {dimension_numbers = #tpu.dot_dimension_numbers<[1], [0], [0], [1], [0, 0, 1, 1], [], []>} : vector<32x128xbf16>, vector<128x384xbf16>, vector<32x384xf32> -> vector<32x384xf32>
    %20 = vector.extract_strided_slice %19 {offsets = [0, 0], sizes = [32, 128], strides = [1, 1]} : vector<32x384xf32> to vector<32x128xf32>
    %cst_15 = arith.constant dense<0.000000e+00> : vector<32x128xf32>
    %21 = tpu.matmul %0, %20, %cst_15 {dimension_numbers = #tpu.dot_dimension_numbers<[1], [0], [0], [1], [0, 0, 1, 1], [], []>} : vector<32x32xf32>, vector<32x128xf32>, vector<32x128xf32> -> vector<32x128xf32>
    %22 = vector.extract_strided_slice %19 {offsets = [0, 256], sizes = [32, 128], strides = [1, 1]} : vector<32x384xf32> to vector<32x128xf32>
    %cst_16 = arith.constant dense<0.000000e+00> : vector<32x128xf32>
    %23 = tpu.matmul %1, %22, %cst_16 {dimension_numbers = #tpu.dot_dimension_numbers<[1], [0], [0], [1], [0, 0, 1, 1], [], []>} : vector<32x32xf32>, vector<32x128xf32>, vector<32x128xf32> -> vector<32x128xf32>
    %24 = arith.addf %21, %23 : vector<32x128xf32>
    %25 = vector.extract_strided_slice %19 {offsets = [0, 128], sizes = [32, 128], strides = [1, 1]} : vector<32x384xf32> to vector<32x128xf32>
    %26 = arith.addf %24, %25 : vector<32x128xf32>
    %c0_17 = arith.constant 0 : index
    %c0_18 = arith.constant 0 : index
    %27 = vector.load %arg5[%c0_17, %c0_18] : memref<1x128xf32, #tpu.memory_space<vmem>>, vector<1x128xf32>
    %28 = vector.broadcast %27 : vector<1x128xf32> to vector<32x128xf32>
    %29 = arith.addf %26, %28 : vector<32x128xf32>
    %cst_19 = arith.constant 0.000000e+00 : f32
    %30 = vector.broadcast %cst_19 : f32 to vector<32x128xf32>
    %31 = arith.maximumf %29, %30 : vector<32x128xf32>
    %c0_20 = arith.constant 0 : index
    %c0_21 = arith.constant 0 : index
    %32 = vector.load %arg8[%c0_20, %c0_21] : memref<32x128xf32, #tpu.memory_space<vmem>>, vector<32x128xf32>
    tpu.vector_store %arg8[%c0_20, %c0_21], %31 {strides = array<i32>} : memref<32x128xf32, #tpu.memory_space<vmem>>, vector<32x128xf32>,
    return
  }
  func.func @transform_0(%arg0: i32) -> (i32, i32) {
    %c0_i32 = arith.constant 0 : i32
    %c0_i32_0 = arith.constant 0 : i32
    return %arg0, %c0_i32 : i32, i32
  }
  func.func @transform_1(%arg0: i32) -> (i32, i32) {
    %c0_i32 = arith.constant 0 : i32
    %c0_i32_0 = arith.constant 0 : i32
    %c0_i32_1 = arith.constant 0 : i32
    return %c0_i32, %c0_i32_0 : i32, i32
  }
  func.func @transform_2(%arg0: i32) -> (i32, i32) {
    %c0_i32 = arith.constant 0 : i32
    %c0_i32_0 = arith.constant 0 : i32
    %c0_i32_1 = arith.constant 0 : i32
    return %c0_i32, %c0_i32_0 : i32, i32
  }
  func.func @transform_3(%arg0: i32) -> (i32, i32) {
    %c0_i32 = arith.constant 0 : i32
    %c0_i32_0 = arith.constant 0 : i32
    %c0_i32_1 = arith.constant 0 : i32
    return %c0_i32, %c0_i32_0 : i32, i32
  }
  func.func @transform_4(%arg0: i32) -> (i32, i32) {
    %c0_i32 = arith.constant 0 : i32
    %c0_i32_0 = arith.constant 0 : i32
    %c0_i32_1 = arith.constant 0 : i32
    return %c0_i32, %c0_i32_0 : i32, i32
  }
  func.func @transform_5(%arg0: i32) -> (i32, i32) {
    %c0_i32 = arith.constant 0 : i32
    %c0_i32_0 = arith.constant 0 : i32
    %c0_i32_1 = arith.constant 0 : i32
    return %c0_i32, %c0_i32_0 : i32, i32
  }
  func.func @transform_6(%arg0: i32) -> (i32, i32) {
    %c0_i32 = arith.constant 0 : i32
    %c0_i32_0 = arith.constant 0 : i32
    %c0_i32_1 = arith.constant 0 : i32
    return %c0_i32, %c0_i32_0 : i32, i32
  }
  func.func @transform_7(%arg0: i32) -> (i32, i32) {
    %c0_i32 = arith.constant 0 : i32
    %c0_i32_0 = arith.constant 0 : i32
    return %arg0, %c0_i32 : i32, i32
  }
}

</mosaic_0001>

<bundles_post_ra>
// kernel: tile.13
= control target key start
LH: loop header
LB: loop body
LE: loop exit
PB: predicated region body
PF: predicated region fallthrough
CT: control target
= control target key end

     0   :  { %s28_s0 = inlined_call_operand.vmem [shape: f32[8], index: 0, kind: input, shape index: {}]   ;;  %s29_s1 = inlined_call_operand.vmem [shape: f32[16,8], index: 1, kind: output, shape index: {}]  }
   0x1   :  { %v4_v0 = vld [vmem:[%s28_s0] ss:$0 sm:$0xff] }
   0x2   :  { %5 = vst [vmem:[%s29_s1] sm:$0xff] %v4_v0 }
   0x3   :  { %8 = vst [vmem:[%s29_s1 + $0x8] sm:$0xff] %v4_v0 }

// kernel: tile.14
= control target key start
LH: loop header
LB: loop body
LE: loop exit
PB: predicated region body
PF: predicated region fallthrough
CT: control target
= control target key end

     0   :  { %s131_s10 = smov 120   ;;  %s132_s11 = smov 104   ;;  %vm3_vm0 = vcmask 64512   ;;  %vm9_vm1 = vcmask 1048512   ;;  %vm15_vm2 = vcmask 982912   ;;  %vm21_vm3 = vcmask 917312   ;;  %s207_s0 = inlined_call_operand.vmem [shape: f32[16,8], index: 0, kind: input, shape index: {}]   ;;  %s208_s1 = inlined_call_operand.vmem [shape: f32[1,128], index: 1, kind: output, shape index: {}]  }
   0x1   :  { %v101_v0 = vld [vmem:[%s207_s0 + $0xf] sm:$0x1]   ;;  %v103_v1 = vld [vmem:[%s207_s0 + $0xd] sm:$0x1]   ;;  %v105_v2 = vld [vmem:[%s207_s0 + $0xb] sm:$0x1]  }
   0x2   :  { %7 = vrot.lane.b32.xlu0 %v101_v0, %s131_s10  ;;  %19 = vrot.lane.b32.xlu1 %v103_v1, %s132_s11  ;;  %s133_s14 = smov 88   ;;  %v102_v3 = vld [vmem:[%s207_s0 + $0xe] sm:$0x1]   ;;  %v104_v4 = vld [vmem:[%s207_s0 + $0xc] sm:$0x1]   ;;  %s134_s19 = smov 112  }
   0x3   :  { %31 = vrot.lane.b32.xlu2 %v105_v2, %s133_s14  ;;  %s135_s20 = smov 96   ;;  %v106_v5 = vld [vmem:[%s207_s0 + $0xa] sm:$0x1]   ;;  %s136_s23 = smov 80   ;;  %v107_v6 = vld [vmem:[%s207_s0 + $0x9] sm:$0x1]  }
   0x4   :  { %v108_v7 = vld [vmem:[%s207_s0 + $0x8] sm:$0x1]   ;;  %s137_s28 = smov 72   ;;  %s138_s29 = smov 64   ;;  %v109_v8 = vld [vmem:[%s207_s0 + $0x7] sm:$0x1]  }
   0x5   :  { %s139_s3 = smov 56   ;;  %v110_v9 = vld [vmem:[%s207_s0 + $0x6] sm:$0x1]   ;;  %v111_v10 = vld [vmem:[%s207_s0 + $0x5] sm:$0x1]   ;;  %s140_s8 = smov 48  }
   0x6   :  { %s141_s9 = smov 40   ;;  %v112_v11 = vld [vmem:[%s207_s0 + $0x4] sm:$0x1]   ;;  %s142_s12 = smov 32   ;;  %v113_v12 = vld [vmem:[%s207_s0 + $0x3] sm:$0x1]  }
   0x7   :  { %v114_v13 = vld [vmem:[%s207_s0 + $0x2] sm:$0x1]   ;;  %s143_s17 = smov 24   ;;  %s144_s18 = smov 16   ;;  %v115_v14 = vld [vmem:[%s207_s0 + $0x1] sm:$0x1]  }
   0x8   :  { %s145_s21 = smov 8   ;;  %v2_v15 = vld [vmem:[%s207_s0] sm:$0x1]   ;;  %vm27_vm4 = vcmask 851712   ;;  %vm33_vm5 = vcmask 786112   ;;  %vm39_vm6 = vcmask 720512  }
   0x9   :  { %4 = vst.msk [vmem:[#allocation0] sm:$0x1] %vm3_vm0, %v2_v15   ;;  %vm45_vm7 = vcmask 654912   ;;  %vm51_vm8 = vcmask 589312   ;;  %vm57_vm9 = vcmask 523712   ;;  %vm63_vm10 = vcmask 458112  }
   0xa   :  { %13 = vrot.lane.b32.xlu0 %v102_v3, %s134_s19  ;;  %25 = vrot.lane.b32.xlu1 %v104_v4, %s135_s20  ;;  %vm69_vm11 = vcmask 392512   ;;  %vm75_vm12 = vcmask 326912   ;;  %vm81_vm13 = vcmask 261312   ;;  %vm87_vm14 = vcmask 195712  }
   0xb   :  { %37 = vrot.lane.b32.xlu2 %v106_v5, %s136_s23  ;;  %vm93_vm15 = vcmask 130112  }
  0x12   :  { %43 = vrot.lane.b32.xlu0 %v107_v6, %s137_s28  ;;  %49 = vrot.lane.b32.xlu1 %v108_v7, %s138_s29 }
  0x13   :  { %55 = vrot.lane.b32.xlu2 %v109_v8, %s139_s3 }
  0x1a   :  { %61 = vrot.lane.b32.xlu0 %v110_v9, %s140_s8  ;;  %67 = vrot.lane.b32.xlu1 %v111_v10, %s141_s9 }
  0x1b   :  { %73 = vrot.lane.b32.xlu2 %v112_v11, %s142_s12 }
  0x22   :  { %79 = vrot.lane.b32.xlu0 %v113_v12, %s143_s17  ;;  %85 = vrot.lane.b32.xlu1 %v114_v13, %s144_s18 }
  0x23   :  { %91 = vrot.lane.b32.xlu2 %v115_v14, %s145_s21 }
  0x5d   :  { %v32_v16 = vpop.permute.xlu2 %31  }
  0x65   :  { %v38_v17 = vpop.permute.xlu2 %37  }
  0x6d   :  { %v56_v18 = vpop.permute.xlu2 %55  }
  0x74   :  { %v8_v19 = vpop.permute.xlu0 %7   ;;  %v20_v20 = vpop.permute.xlu1 %19  }
  0x75   :  { %10 = vst.msk [vmem:[#allocation0] sm:$0x1] %vm9_vm1, %v8_v19   ;;  %v74_v21 = vpop.permute.xlu2 %73  }
  0x7c   :  { %v14_v22 = vpop.permute.xlu0 %13   ;;  %v26_v23 = vpop.permute.xlu1 %25  }
  0x7d   :  { %16 = vst.msk [vmem:[#allocation0] sm:$0x1] %vm15_vm2, %v14_v22   ;;  %v92_v24 = vpop.permute.xlu2 %91  }
  0x7e   :  { %22 = vst.msk [vmem:[#allocation0] sm:$0x1] %vm21_vm3, %v20_v20  }
  0x7f   :  { %28 = vst.msk [vmem:[#allocation0] sm:$0x1] %vm27_vm4, %v26_v23  }
  0x80   :  { %34 = vst.msk [vmem:[#allocation0] sm:$0x1] %vm33_vm5, %v32_v16  }
  0x81   :  { %40 = vst.msk [vmem:[#allocation0] sm:$0x1] %vm39_vm6, %v38_v17  }
  0x84   :  { %v44_v25 = vpop.permute.xlu0 %43   ;;  %v50_v26 = vpop.permute.xlu1 %49  }
  0x85   :  { %46 = vst.msk [vmem:[#allocation0] sm:$0x1] %vm45_vm7, %v44_v25  }
  0x86   :  { %52 = vst.msk [vmem:[#allocation0] sm:$0x1] %vm51_vm8, %v50_v26  }
  0x87   :  { %58 = vst.msk [vmem:[#allocation0] sm:$0x1] %vm57_vm9, %v56_v18  }
  0x8c   :  { %v62_v27 = vpop.permute.xlu0 %61   ;;  %v68_v28 = vpop.permute.xlu1 %67  }
  0x8d   :  { %64 = vst.msk [vmem:[#allocation0] sm:$0x1] %vm63_vm10, %v62_v27  }
  0x8e   :  { %70 = vst.msk [vmem:[#allocation0] sm:$0x1] %vm69_vm11, %v68_v28  }
  0x8f   :  { %76 = vst.msk [vmem:[#allocation0] sm:$0x1] %vm75_vm12, %v74_v21  }
  0x94   :  { %v80_v29 = vpop.permute.xlu0 %79   ;;  %v86_v30 = vpop.permute.xlu1 %85  }
  0x95   :  { %82 = vst.msk [vmem:[#allocation0] sm:$0x1] %vm81_vm13, %v80_v29  }
  0x96   :  { %88 = vst.msk [vmem:[#allocation0] sm:$0x1] %vm87_vm14, %v86_v30  }
  0x97   :  { %94 = vst.msk [vmem:[#allocation0] sm:$0x1] %vm93_vm15, %v92_v24  }
  0x9e   :  { %v97_v31 = vld [vmem:[#allocation0] sm:$0x1] }
  0x9f   :  { %100 = vst [vmem:[%s208_s1] sm:$0x1] %v97_v31 }

// kernel: conv_block.1
= control target key start
LH: loop header
LB: loop body
LE: loop exit
PB: predicated region body
PF: predicated region fallthrough
CT: control target
= control target key end

     0   :  { %vm129_vm0 = vcmask 523264   ;;  %vm193_vm1 = vcmask 261120   ;;  %s1173_s1 = inlined_call_operand.vmem [shape: bf16[64,384], index: 1, kind: input, shape index: {}]   ;;  %s1174_s0 = inlined_call_operand.vmem [shape: bf16[32,64], index: 0, kind: input, shape index: {}]   ;;  %s1175_s6 = inlined_call_operand.vmem [shape: f32[32,32], index: 6, kind: input, shape index: {}]   ;;  %s1176_s5 = inlined_call_operand.vmem [shape: f32[32,32], index: 5, kind: input, shape index: {}]   ;;  %s1177_s2 = inlined_call_operand.vmem [shape: f32[1,128], index: 2, kind: input, shape index: {}]   ;;  %s1178_s3 = inlined_call_operand.vmem [shape: bf16[128,384], index: 3, kind: input, shape index: {}]   ;;  %s1179_s4 = inlined_call_operand.vmem [shape: f32[1,128], index: 4, kind: input, shape index: {}]   ;;  %s1180_s7 = inlined_call_operand.vmem [shape: f32[32,128], index: 7, kind: output, shape index: {}]  }
   0x1   :  { %v647_v0 = vld [vmem:[%s1173_s1 + $0x50] sm:$0xf]  ;;  %v780_v1 = vld [vmem:[%s1173_s1 + $0x58] sm:$0xf0]  ;;  %v635_v2 = vld [vmem:[%s1173_s1 + $0x38] sm:$0xf] }
   0x2   :  { %v648_v3 = vor.u32 %v780_v1, %v647_v0  ;;  %v777_v4 = vld [vmem:[%s1173_s1 + $0x40] sm:$0xf0]  ;;  %v639_v5 = vld [vmem:[%s1173_s1 + $0x48] sm:$0xf]  ;;  %v779_v7 = vld [vmem:[%s1173_s1 + $0x50] sm:$0xf0] }
   0x3   :  { %v636_v6 = vor.u32 %v777_v4, %v635_v2  ;;  %v627_v8 = vld [vmem:[%s1173_s1 + $0x30] sm:$0xf]  ;;  %v623_v9 = vld [vmem:[%s1173_s1 + $0x20] sm:$0xf]  ;;  %v774_v10 = vld [vmem:[%s1173_s1 + $0x28] sm:$0xf0]  ;;  %v640_v11 = vor.u32 %v779_v7, %v639_v5 }
   0x4   :  { %178 = vmatpush.bf16.msra.mxu2 %v648_v3  ;;  %v776_v12 = vld [vmem:[%s1173_s1 + $0x38] sm:$0xf0]  ;;  %v624_v14 = vor.u32 %v774_v10, %v623_v9  ;;  %v615_v15 = vld [vmem:[%s1173_s1 + $0x18] sm:$0xf]  ;;  %v773_v16 = vld [vmem:[%s1173_s1 + $0x20] sm:$0xf0] }
   0x5   :  { %140 = vmatpush.bf16.msra.mxu0 %v640_v11  ;;  %v628_v13 = vor.u32 %v776_v12, %v627_v8  ;;  %v611_v17 = vld [vmem:[%s1173_s1 + $0x8] sm:$0xf]  ;;  %v771_v18 = vld [vmem:[%s1173_s1 + $0x10] sm:$0xf0]  ;;  %v616_v19 = vor.u32 %v773_v16, %v615_v15  ;;  %v603_v21 = vld [vmem:[%s1173_s1] sm:$0xf] }
   0x6   :  { %v612_v20 = vor.u32 %v771_v18, %v611_v17  ;;  %v770_v22 = vld [vmem:[%s1173_s1 + $0x8] sm:$0xf0]  ;;  %v767_v23 = vld [vmem:[%s1174_s0] sm:$0xff]  ;;  %v641_v31 = vld [vmem:[%s1173_s1 + $0x54] sm:$0xf0] }
   0x7   :  { %v604_v24 = vor.u32 %v770_v22, %v603_v21  ;;  %v768_v25 = vld [vmem:[%s1174_s0 + $0x8] sm:$0xff]  ;;  %v775_v34 = vld [vmem:[%s1173_s1 + $0x34] sm:$0xf]  ;;  %v629_v35 = vld [vmem:[%s1173_s1 + $0x3c] sm:$0xf0] }
   0x8   :  { %179 = vmatpush.bf16.msra.mxu2 %v636_v6  ;;  %v778_v30 = vld [vmem:[%s1173_s1 + $0x4c] sm:$0xf]  ;;  %v632_v36 = vor.u32 %v775_v34, %v629_v35  ;;  %v772_v38 = vld [vmem:[%s1173_s1 + $0x1c] sm:$0xf]  ;;  %v617_v39 = vld [vmem:[%s1173_s1 + $0x24] sm:$0xf0] }
   0x9   :  { %141 = vmatpush.bf16.msra.mxu0 %v628_v13  ;;  %v644_v33 = vor.u32 %v778_v30, %v641_v31  ;;  %v620_v41 = vor.u32 %v772_v38, %v617_v39  ;;  %v769_v42 = vld [vmem:[%s1173_s1 + $0x4] sm:$0xf]  ;;  %v605_v43 = vld [vmem:[%s1173_s1 + $0xc] sm:$0xf0]  ;;  %v948_v47 = vld [vmem:[%s1175_s6 + $0x8] sm:$0xff] }
   0xa   :  { %v608_v44 = vor.u32 %v769_v42, %v605_v43  ;;  %v940_v45 = vld [vmem:[%s1175_s6] sm:$0xff]  ;;  %v955_v48 = vld [vmem:[%s1175_s6 + $0x10] sm:$0xff]  ;;  %v963_v49 = vld [vmem:[%s1175_s6 + $0x18] sm:$0xff] }
   0xb   :  { %159 = vmatpush.bf16.msra.mxu1 %v644_v33  ;;  %v970_v50 = vld [vmem:[%s1176_s5] sm:$0xff]  ;;  %v977_v51 = vld [vmem:[%s1176_s5 + $0x8] sm:$0xff]  ;;  %v984_v52 = vld [vmem:[%s1176_s5 + $0x10] sm:$0xff] }
   0xc   :  { %180 = vmatpush.bf16.msra.mxu2 %v624_v14  ;;  %v991_v53 = vld [vmem:[%s1176_s5 + $0x18] sm:$0xff]  ;;  %v749_v54 = vld [vmem:[%s1178_s3 + $0xa8] sm:$0xf]  ;;  %v803_v55 = vld [vmem:[%s1178_s3 + $0xb0] sm:$0xf0] }
   0xd   :  { %142 = vmatpush.bf16.msra.mxu0 %v616_v19  ;;  %v802_v56 = vld [vmem:[%s1178_s3 + $0xac] sm:$0xf]  ;;  %v750_v57 = vor.u32 %v803_v55, %v749_v54  ;;  %v751_v58 = vld [vmem:[%s1178_s3 + $0xb4] sm:$0xf0]  ;;  %v757_v59 = vld [vmem:[%s1178_s3 + $0xb0] sm:$0xf] }
   0xe   :  { %v804_v60 = vld [vmem:[%s1178_s3 + $0xb8] sm:$0xf0]  ;;  %v754_v61 = vor.u32 %v802_v56, %v751_v58  ;;  %v737_v63 = vld [vmem:[%s1178_s3 + $0x90] sm:$0xf]  ;;  %v799_v1 = vld [vmem:[%s1178_s3 + $0x94] sm:$0xf] }
   0xf   :  { %160 = vmatpush.bf16.msra.mxu1 %v632_v36  ;;  %v758_v62 = vor.u32 %v804_v60, %v757_v59  ;;  %v800_v0 = vld [vmem:[%s1178_s3 + $0x98] sm:$0xf0]  ;;  %v739_v3 = vld [vmem:[%s1178_s3 + $0x9c] sm:$0xf0]  ;;  %v745_v4 = vld [vmem:[%s1178_s3 + $0x98] sm:$0xf] }
  0x10   :  { %181 = vmatpush.bf16.msra.mxu2 %v612_v20  ;;  %v738_v2 = vor.u32 %v800_v0, %v737_v63  ;;  %v801_v5 = vld [vmem:[%s1178_s3 + $0xa0] sm:$0xf0]  ;;  %v742_v6 = vor.u32 %v799_v1, %v739_v3  ;;  %v725_v8 = vld [vmem:[%s1178_s3 + $0x78] sm:$0xf]  ;;  %v796_v10 = vld [vmem:[%s1178_s3 + $0x7c] sm:$0xf] }
  0x11   :  { %143 = vmatpush.bf16.msra.mxu0 %v604_v24  ;;  %v746_v7 = vor.u32 %v801_v5, %v745_v4  ;;  %v797_v9 = vld [vmem:[%s1178_s3 + $0x80] sm:$0xf0]  ;;  %v727_v12 = vld [vmem:[%s1178_s3 + $0x84] sm:$0xf0]  ;;  %v733_v13 = vld [vmem:[%s1178_s3 + $0x80] sm:$0xf] }
  0x12   :  { %v726_v11 = vor.u32 %v797_v9, %v725_v8  ;;  %v798_v14 = vld [vmem:[%s1178_s3 + $0x88] sm:$0xf0]  ;;  %v730_v15 = vor.u32 %v796_v10, %v727_v12  ;;  %v713_v17 = vld [vmem:[%s1178_s3 + $0x60] sm:$0xf]  ;;  %v793_v19 = vld [vmem:[%s1178_s3 + $0x64] sm:$0xf] }
  0x13   :  { %653 = vmatmul.msk.bf16.vlgmr.msra.gmra.mxu2 %vm129_vm0, %v767_v23  ;;  %161 = vmatpush.bf16.msra.mxu1 %v620_v41  ;;  %v734_v16 = vor.u32 %v798_v14, %v733_v13  ;;  %v794_v18 = vld [vmem:[%s1178_s3 + $0x68] sm:$0xf0]  ;;  %v715_v21 = vld [vmem:[%s1178_s3 + $0x6c] sm:$0xf0]  ;;  %v721_v22 = vld [vmem:[%s1178_s3 + $0x68] sm:$0xf] }
  0x14   :  { %649 = vmatmul.msk.bf16.vlgmr.msra.gmra.mxu0 %vm129_vm0, %v767_v23  ;;  %492 = vmatpush.bf16.msrb.mxu2 %v758_v62  ;;  %v714_v20 = vor.u32 %v794_v18, %v713_v17  ;;  %v703_v31 = vld [vmem:[%s1178_s3 + $0x54] sm:$0xf0]  ;;  %v792_v34 = vld [vmem:[%s1178_s3 + $0x58] sm:$0xf0]  ;;  %v689_v36 = vld [vmem:[%s1178_s3 + $0x30] sm:$0xf] }
  0x15   :  { %454 = vmatpush.bf16.msrb.mxu0 %v750_v57  ;;  %v787_v38 = vld [vmem:[%s1178_s3 + $0x34] sm:$0xf]  ;;  %v697_v41 = vld [vmem:[%s1178_s3 + $0x38] sm:$0xf]  ;;  %v789_v42 = vld [vmem:[%s1178_s3 + $0x40] sm:$0xf0] }
  0x16   :  { %v677_v54 = vld [vmem:[%s1178_s3 + $0x18] sm:$0xf]  ;;  %v785_v55 = vld [vmem:[%s1178_s3 + $0x20] sm:$0xf0]  ;;  %v784_v56 = vld [vmem:[%s1178_s3 + $0x1c] sm:$0xf] }
  0x17   :  { %162 = vmatpush.bf16.msra.mxu1 %v608_v44  ;;  %v678_v57 = vor.u32 %v785_v55, %v677_v54  ;;  %v679_v58 = vld [vmem:[%s1178_s3 + $0x24] sm:$0xf0]  ;;  %v685_v59 = vld [vmem:[%s1178_s3 + $0x20] sm:$0xf]  ;;  %v786_v60 = vld [vmem:[%s1178_s3 + $0x28] sm:$0xf0] }
  0x18   :  { %493 = vmatpush.bf16.msrb.mxu2 %v746_v7  ;;  %v686_v62 = vor.u32 %v786_v60, %v685_v59  ;;  %v665_v63 = vld [vmem:[%s1178_s3] sm:$0xf]  ;;  %v782_v0 = vld [vmem:[%s1178_s3 + $0x8] sm:$0xf0]  ;;  %v781_v1 = vld [vmem:[%s1178_s3 + $0x4] sm:$0xf] }
  0x19   :  { %455 = vmatpush.bf16.msrb.mxu0 %v738_v2  ;;  %v666_v2 = vor.u32 %v782_v0, %v665_v63  ;;  %v667_v3 = vld [vmem:[%s1178_s3 + $0xc] sm:$0xf0]  ;;  %v673_v4 = vld [vmem:[%s1178_s3 + $0x8] sm:$0xf]  ;;  %v783_v5 = vld [vmem:[%s1178_s3 + $0x10] sm:$0xf0] }
  0x1a   :  { %651 = vmatmul.msk.bf16.vlgmr.msra.gmra.mxu1 %vm129_vm0, %v767_v23  ;;  %v795_v23 = vld [vmem:[%s1178_s3 + $0x70] sm:$0xf0]  ;;  %v670_v7 = vor.u32 %v781_v1, %v667_v3  ;;  %v674_v8 = vor.u32 %v783_v5, %v673_v4 }
  0x1b   :  { %473 = vmatpush.bf16.msrb.mxu1 %v754_v61  ;;  %v682_v61 = vor.u32 %v784_v56, %v679_v58 }
  0x1c   :  { %494 = vmatpush.bf16.msrb.mxu2 %v734_v16 }
  0x1d   :  { %456 = vmatpush.bf16.msrb.mxu0 %v726_v11 }
  0x1f   :  { %474 = vmatpush.bf16.msrb.mxu1 %v742_v6 }
  0x21   :  { %457 = vmatpush.bf16.msrb.mxu0 %v714_v20 }
  0x23   :  { %654 = vmatmul.msk.bf16.gmra.mxu2 %vm129_vm0, %v768_v25  ;;  %475 = vmatpush.bf16.msrb.mxu1 %v730_v15  ;;  %v813_v15 = vld [vmem:[%s1177_s2] ss:$0 sm:$0xff] }
  0x24   :  { %650 = vmatmul.msk.bf16.gmra.mxu0 %vm129_vm0, %v768_v25 }
  0x2a   :  { %652 = vmatmul.msk.bf16.gmra.mxu1 %vm129_vm0, %v768_v25  ;;  %v718_v25 = vor.u32 %v793_v19, %v715_v21 }
  0x2c   :  { %476 = vmatpush.bf16.msrb.mxu1 %v718_v25 }
  0x91   :  { %v145_v27 = vpop.f32.mrf.mxu0 }
  0x96   :  { %v183_v26 = vpop.f32.mrf.mxu2 }
  0x97   :  { %v164_v10 = vpop.f32.mrf.mxu1 }
  0x99   :  { %v147_v29 = vpop.f32.mrf.mxu0 }
  0x9e   :  { %v185_v28 = vpop.f32.mrf.mxu2 }
  0x9f   :  { %v166_v13 = vpop.f32.mrf.mxu1 }
  0xa1   :  { %v150_v37 = vpop.f32.mrf.mxu0 }
  0xa6   :  { %v188_v32 = vpop.f32.mrf.mxu2 }
  0xa9   :  { %v152_v46 = vpop.f32.mrf.mxu0 }
  0xae   :  { %v190_v40 = vpop.f32.mrf.mxu2 }
  0xaf   :  { %218 = vmatpush.msra.mxu3 %v190_v40  ;;  %v691_v40 = vld [vmem:[%s1178_s3 + $0x3c] sm:$0xf0] }
  0xb0   :  { %v694_v44 = vor.u32 %v787_v38, %v691_v40 }
  0xb1   :  { %219 = vmatpush.msra.mxu3 %v188_v32  ;;  %v709_v32 = vld [vmem:[%s1178_s3 + $0x50] sm:$0xf] }
  0xb2   :  { %v710_v35 = vor.u32 %v792_v34, %v709_v32 }
  0xb3   :  { %220 = vmatpush.msra.mxu3 %v185_v28  ;;  %v791_v28 = vld [vmem:[%s1178_s3 + $0x50] sm:$0xf0] }
  0xb5   :  { %221 = vmatpush.msra.mxu3 %v183_v26  ;;  %v722_v26 = vor.u32 %v795_v23, %v721_v22  ;;  %v169_v23 = vpop.f32.mrf.mxu1 }
  0xb6   :  { %655 = vmatmul.msk.f32.vlgmr.msra.gmra.mxu3 %vm193_vm1, %v940_v45 }
  0xb7   :  { %259 = vmatpush.msrb.mxu3 %v152_v46  ;;  %495 = vmatpush.bf16.msrb.mxu2 %v722_v26  ;;  %v698_v46 = vor.u32 %v789_v42, %v697_v41 }
  0xb9   :  { %260 = vmatpush.msrb.mxu3 %v150_v37  ;;  %v788_v37 = vld [vmem:[%s1178_s3 + $0x38] sm:$0xf0] }
  0xba   :  { %v690_v39 = vor.u32 %v788_v37, %v689_v36 }
  0xbb   :  { %261 = vmatpush.msrb.mxu3 %v147_v29  ;;  %v790_v29 = vld [vmem:[%s1178_s3 + $0x4c] sm:$0xf]  ;;  %496 = vmatpush.bf16.msrb.mxu2 %v710_v35 }
  0xbc   :  { %v706_v33 = vor.u32 %v790_v29, %v703_v31 }
  0xbd   :  { %262 = vmatpush.msrb.mxu3 %v145_v27  ;;  %v701_v27 = vld [vmem:[%s1178_s3 + $0x48] sm:$0xf] }
  0xbe   :  { %656 = vmatmul.msk.f32.gmra.mxu3 %vm193_vm1, %v948_v47  ;;  %v702_v30 = vor.u32 %v791_v28, %v701_v27  ;;  %477 = vmatpush.bf16.msrb.mxu1 %v706_v33 }
  0xbf   :  { %497 = vmatpush.bf16.msrb.mxu2 %v698_v46 }
  0xc0   :  { %458 = vmatpush.bf16.msrb.mxu0 %v702_v30  ;;  %v171_v30 = vpop.f32.mrf.mxu1 }
  0xc2   :  { %478 = vmatpush.bf16.msrb.mxu1 %v694_v44 }
  0xc3   :  { %498 = vmatpush.bf16.msrb.mxu2 %v686_v62 }
  0xc4   :  { %459 = vmatpush.bf16.msrb.mxu0 %v690_v39 }
  0xc6   :  { %657 = vmatmul.msk.f32.gmra.mxu3 %vm193_vm1, %v955_v48  ;;  %479 = vmatpush.bf16.msrb.mxu1 %v682_v61 }
  0xc7   :  { %499 = vmatpush.bf16.msrb.mxu2 %v674_v8 }
  0xc8   :  { %460 = vmatpush.bf16.msrb.mxu0 %v678_v57 }
  0xca   :  { %480 = vmatpush.bf16.msrb.mxu1 %v670_v7 }
  0xcc   :  { %461 = vmatpush.bf16.msrb.mxu0 %v666_v2 }
  0xce   :  { %658 = vmatmul.msk.f32.gmra.mxu3 %vm193_vm1, %v963_v49 }
  0xd6   :  { %659 = vmatmul.msk.f32.vlgmr.msrb.gmra.mxu3 %vm193_vm1, %v970_v50 }
  0xde   :  { %660 = vmatmul.msk.f32.gmra.mxu3 %vm193_vm1, %v977_v51 }
  0xe6   :  { %661 = vmatmul.msk.f32.gmra.mxu3 %vm193_vm1, %v984_v52 }
  0xee   :  { %662 = vmatmul.msk.f32.gmra.mxu3 %vm193_vm1, %v991_v53 }
 0x139   :  { %v223_v24 = vpop.f32.mrf.mxu3 }
 0x141   :  { %v226_v43 = vpop.f32.mrf.mxu3 }
 0x149   :  { %v229_v6 = vpop.f32.mrf.mxu3 }
 0x151   :  { %v232_v9 = vpop.f32.mrf.mxu3 }
 0x159   :  { %v264_v11 = vpop.f32.mrf.mxu3 }
 0x15a   :  { %v265_v12 = vadd.f32 %v264_v11, %v223_v24 }
 0x15c   :  { %v276_v14 = vadd.f32 %v265_v12, %v164_v10 }
 0x15e   :  { %v284_v18 = vadd.f32 %v813_v15, %v276_v14 }
 0x160   :  { %v288_v21 = vmax.f32 %v284_v18, 0.0 }
 0x161   :  { %v267_v16 = vpop.f32.mrf.mxu3 }
 0x162   :  { %v268_v17 = vadd.f32 %v267_v16, %v226_v43 }
 0x164   :  { %v277_v19 = vadd.f32 %v268_v17, %v166_v13 }
 0x166   :  { %v285_v20 = vadd.f32 %v813_v15, %v277_v19 }
 0x168   :  { %v289_v22 = vmax.f32 %v285_v20, 0.0 }
 0x169   :  { %v270_v25 = vpop.f32.mrf.mxu3 }
 0x16a   :  { %v292_v26 = vpack.c.bf16 %v289_v22, %v288_v21  ;;  %v271_v27 = vadd.f32 %v270_v25, %v229_v6 }
 0x16c   :  { %462 = vmatmul.bf16.vlgmr.msrb.gmra.mxu0 %v292_v26  ;;  %481 = vmatmul.bf16.vlgmr.msrb.gmra.mxu1 %v292_v26  ;;  %v278_v24 = vadd.f32 %v271_v27, %v169_v23 }
 0x16d   :  { %500 = vmatmul.bf16.vlgmr.msrb.gmra.mxu2 %v292_v26 }
 0x16e   :  { %v286_v31 = vadd.f32 %v813_v15, %v278_v24 }
 0x170   :  { %v290_v34 = vmax.f32 %v286_v31, 0.0 }
 0x171   :  { %v273_v28 = vpop.f32.mrf.mxu3 }
 0x172   :  { %v274_v29 = vadd.f32 %v273_v28, %v232_v9 }
 0x174   :  { %v279_v32 = vadd.f32 %v274_v29, %v171_v30 }
 0x176   :  { %v287_v33 = vadd.f32 %v813_v15, %v279_v32 }
 0x178   :  { %v291_v35 = vmax.f32 %v287_v33, 0.0 }
 0x17a   :  { %v293_v36 = vpack.c.bf16 %v291_v35, %v290_v34 }
 0x17c   :  { %467 = vmatmul.bf16.gmra.mxu0 %v293_v36  ;;  %486 = vmatmul.bf16.gmra.mxu1 %v293_v36 }
 0x17d   :  { %505 = vmatmul.bf16.gmra.mxu2 %v293_v36 }
 0x1e9   :  { %v463_v37 = vpop.f32.mrf.mxu0 }
 0x1f0   :  { %v501_v38 = vpop.f32.mrf.mxu2 }
 0x1f1   :  { %v465_v39 = vpop.f32.mrf.mxu0 }
 0x1f8   :  { %v503_v40 = vpop.f32.mrf.mxu2 }
 0x1f9   :  { %v468_v41 = vpop.f32.mrf.mxu0 }
 0x200   :  { %v506_v42 = vpop.f32.mrf.mxu2 }
 0x201   :  { %v470_v43 = vpop.f32.mrf.mxu0 }
 0x202   :  { %552 = vmatpush.msra.mxu0 %v470_v43  ;;  %809 = vmatpush.msra.mxu1 %v470_v43 }
 0x204   :  { %553 = vmatpush.msra.mxu0 %v468_v41  ;;  %810 = vmatpush.msra.mxu1 %v468_v41 }
 0x206   :  { %554 = vmatpush.msra.mxu0 %v465_v39  ;;  %811 = vmatpush.msra.mxu1 %v465_v39 }
 0x208   :  { %v508_v44 = vpop.f32.mrf.mxu2  ;;  %555 = vmatpush.msra.mxu0 %v463_v37  ;;  %812 = vmatpush.msra.mxu1 %v463_v37 }
 0x209   :  { %523 = vmatpush.msra.mxu2 %v508_v44  ;;  %805 = vmatpush.msra.mxu3 %v508_v44 }
 0x20a   :  { %763 = vmatmul.msk.f32.vlgmr.msra.gmra.mxu0 %vm193_vm1, %v970_v50  ;;  %765 = vmatmul.msk.f32.vlgmr.msra.gmra.mxu1 %vm193_vm1, %v984_v52  ;;  %v482_v50 = vpop.f32.mrf.mxu1 }
 0x20b   :  { %524 = vmatpush.msra.mxu2 %v506_v42  ;;  %806 = vmatpush.msra.mxu3 %v506_v42 }
 0x20d   :  { %525 = vmatpush.msra.mxu2 %v503_v40  ;;  %807 = vmatpush.msra.mxu3 %v503_v40 }
 0x20f   :  { %526 = vmatpush.msra.mxu2 %v501_v38  ;;  %808 = vmatpush.msra.mxu3 %v501_v38 }
 0x210   :  { %759 = vmatmul.msk.f32.vlgmr.msra.gmra.mxu2 %vm193_vm1, %v940_v45  ;;  %760 = vmatmul.msk.f32.vlgmr.msra.gmra.mxu3 %vm193_vm1, %v948_v47 }
 0x212   :  { %764 = vmatmul.msk.f32.gmra.mxu0 %vm193_vm1, %v977_v51  ;;  %766 = vmatmul.msk.f32.gmra.mxu1 %vm193_vm1, %v991_v53  ;;  %v484_v52 = vpop.f32.mrf.mxu1  ;;  %v814_v51 = vld [vmem:[%s1179_s4] ss:$0 sm:$0xff] }
 0x218   :  { %761 = vmatmul.msk.f32.gmra.mxu3 %vm193_vm1, %v955_v48 }
 0x21a   :  { %v487_v46 = vpop.f32.mrf.mxu1 }
 0x220   :  { %762 = vmatmul.msk.f32.gmra.mxu3 %vm193_vm1, %v963_v49 }
 0x222   :  { %v489_v45 = vpop.f32.mrf.mxu1 }
 0x287   :  { %v557_v54 = vpop.f32.mrf.mxu0  ;;  %v563_v48 = vpop.f32.mrf.mxu1 }
 0x28f   :  { %v560_v55 = vpop.f32.mrf.mxu0  ;;  %v566_v3 = vpop.f32.mrf.mxu1 }
 0x293   :  { %v528_v56 = vpop.f32.mrf.mxu2  ;;  %v531_v47 = vpop.f32.mrf.mxu3 }
 0x294   :  { %v558_v57 = vadd.f32 %v557_v54, %v528_v56  ;;  %v561_v53 = vadd.f32 %v560_v55, %v531_v47 }
 0x296   :  { %v569_v58 = vadd.f32 %v558_v57, %v482_v50  ;;  %v570_v59 = vadd.f32 %v561_v53, %v484_v52 }
 0x298   :  { %v577_v60 = vadd.f32 %v814_v51, %v569_v58  ;;  %v578_v61 = vadd.f32 %v814_v51, %v570_v59 }
 0x29a   :  { %v581_v49 = vmax.f32 %v577_v60, 0.0  ;;  %v582_v62 = vmax.f32 %v578_v61, 0.0 }
 0x29b   :  { %v534_v63 = vpop.f32.mrf.mxu3 }
 0x29c   :  { %585 = vst [vmem:[%s1180_s7] sm:$0xff] %v581_v49  ;;  %v564_v0 = vadd.f32 %v563_v48, %v534_v63 }
 0x29d   :  { %586 = vst [vmem:[%s1180_s7 + $0x8] sm:$0xff] %v582_v62 }
 0x29e   :  { %v571_v1 = vadd.f32 %v564_v0, %v487_v46 }
 0x2a0   :  { %v579_v2 = vadd.f32 %v814_v51, %v571_v1 }
 0x2a2   :  { %v583_v4 = vmax.f32 %v579_v2, 0.0 }
 0x2a3   :  { %v537_v5 = vpop.f32.mrf.mxu3 }
 0x2a4   :  { %587 = vst [vmem:[%s1180_s7 + $0x10] sm:$0xff] %v583_v4  ;;  %v567_v6 = vadd.f32 %v566_v3, %v537_v5 }
 0x2a6   :  { %v572_v7 = vadd.f32 %v567_v6, %v489_v45 }
 0x2a8   :  { %v580_v8 = vadd.f32 %v814_v51, %v572_v7 }
 0x2aa   :  { %v584_v9 = vmax.f32 %v580_v8, 0.0 }
 0x2ac   :  { %588 = vst [vmem:[%s1180_s7 + $0x18] sm:$0xff] %v584_v9 }

</bundles_post_ra>
